<compile_context>
chip_gen: v5e
topology: v5e:2x2
jax: 0.10.0
libtpu: 0.0.40
codegen_flags: <defaults>
</compile_context>

<pallas_src>
import functools

import jax
import jax.numpy as jnp
from jax.experimental import pallas as pl
from jax.experimental.pallas import tpu as pltpu


_MAX_COL_TILE = 4096            # lane-dense column tile target (multiple of 128)
_PALLAS_MIN_ELEMS = 1 << 20     # below this, fused XLA beats any kernel launch
_MIN_STEPS_MULTICORE = 8        # >=4 pipelined steps per TensorCore on v7x
_MIN_STEPS_SINGLECORE = 4       # keep the double-buffer in steady state


def _round_up(x, m):
    return ((x + m - 1) // m) * m


def _vmem_capacity_bytes():
    try:
        return int(pltpu.get_tpu_info().vmem_capacity_bytes)
    except Exception:
        return 64 * 1024 * 1024                       # conservative (v7x per-TC)


def _tensorcores_per_chip():
    try:
        return 2 if "v7" in jax.devices()[0].device_kind.lower() else 1
    except Exception:
        return 1


def _supports_bf16_alu():
    # bf16 VALU/EUP exists on v6e/v7x; v5e and older must keep the f32 path.
    try:
        kind = jax.devices()[0].device_kind.lower()
        return not any(m in kind for m in ("v2", "v3", "v4", "v5"))
    except Exception:
        return False


def _vmem_policy():
    """(tile_budget_bytes, scoped_vmem_limit_bytes) for this TPU generation."""
    cap = _vmem_capacity_bytes()
    if cap >= 96 * 1024 * 1024:                       # v5e / v6e: 128 MiB physical
        return 72 * 1024 * 1024, 96 * 1024 * 1024
    return 28 * 1024 * 1024, 40 * 1024 * 1024         # v7x: 64 MiB physical


def _select_tiles(B, F, h_itemsize, o_itemsize, p_itemsize, tile_budget, num_cores):
    """Pick (TB, TF): lane-dense column tiles, evenly-split dtype-aligned row tiles."""
    # Sublane multiple native to the narrowest I/O dtype (f32:8, bf16:16, i8/fp8:32).
    sub = {4: 8, 2: 16, 1: 32}.get(min(h_itemsize, o_itemsize), 8)

    # Column tile: full dim when small (always layout-legal), else an even
    # 128-aligned split; the final column block is edge-masked by Pallas.
    if F <= _MAX_COL_TILE:
        TF = F
    else:
        n_col = pl.cdiv(F, _MAX_COL_TILE)
        TF = min(_round_up(pl.cdiv(F, n_col), 128), _MAX_COL_TILE)
    n_col = pl.cdiv(F, TF)

    # Row-tile cap: double-buffered in + out tiles plus the resident stacked-param
    # tile (3 sublanes padded to 8, double-buffered) must fit the VMEM budget.
    per_row = 2 * TF * (h_itemsize + o_itemsize)
    param_bytes = 2 * 8 * TF * p_itemsize
    tb_cap = max(sub, min(B, (tile_budget - param_bytes) // per_row))

    # Split the batch axis into (near-)equal blocks instead of max-tile + ragged tail,
    # and keep enough grid steps for the pipeline (and both v7x cores) to stay busy.
    n_row = pl.cdiv(B, tb_cap)
    min_steps = _MIN_STEPS_MULTICORE if num_cores > 1 else _MIN_STEPS_SINGLECORE
    n_row = max(n_row, pl.cdiv(min_steps, n_col))
    if num_cores > 1 and (n_row * n_col) % 2:
        n_row += 1                                   # even step count across 2 TCs
    TB = _round_up(pl.cdiv(B, n_row), sub)           # dtype-native sublane alignment
    if TB >= B:
        TB = B                                       # full-dim block is always legal
    return TB, TF


def _label_pooler_kernel(h_ref, p_ref, o_ref, *, epilogue_dtype):
    # h_ref: (TB, TF) tile of the flattened hidden states
    # p_ref: (3, TF) stacked [dense; label_outputs; label_biases] column tile
    # tanh (EUP) always in f32 so bf16-storage configs track the f32 reference.
    h = h_ref[...].astype(jnp.float32)
    # Each (1, TF) param slice is consumed exactly once below, so exactly one
    # sublane broadcast is emitted per param per tile (no per-use broadcasts).
    dense = p_ref[0:1, :].astype(jnp.float32)
    w = p_ref[1:2, :].astype(epilogue_dtype)
    b = p_ref[2:3, :].astype(epilogue_dtype)
    x = jnp.tanh(h * dense)
    # Epilogue in bf16 only on bf16-capable chips with an all-bf16 I/O path
    # (fewer casts / half-width VALU ops); f32 otherwise (v5e has no bf16 VPU).
    o_ref[...] = (x.astype(epilogue_dtype) * w + b).astype(o_ref.dtype)


def label_pooler_ref(hidden_states, dense, label_outputs, label_biases):
    return jnp.tanh(hidden_states * dense) * label_outputs + label_biases


def label_pooler(hidden_states, dense, label_outputs, label_biases, *,
                 out_dtype=None, use_pallas=None):
    """hidden_states: [B, L, D]; params: [L, D] -> [B, L, D]."""
    B, L, D = hidden_states.shape
    F = L * D

    # Match XLA/PyTorch promotion (bf16 hidden x f32 params -> f32 output) so the
    # Pallas path and the fused-XLA fallback agree; callers may narrow explicitly
    # (bandwidth-bound op: a bf16 output cuts total HBM bytes by ~25-33%).
    if out_dtype is None:
        out_dtype = jnp.result_type(hidden_states.dtype, dense.dtype,
                                    label_outputs.dtype, label_biases.dtype)
    out_dtype = jnp.dtype(out_dtype)

    if use_pallas is None:
        use_pallas = B * F >= _PALLAS_MIN_ELEMS
    if not use_pallas:
        # Tiny problems: per-step overhead (~0.35 us) exceeds all the compute.
        return label_pooler_ref(hidden_states, dense, label_outputs,
                                label_biases).astype(out_dtype)

    h2d = hidden_states.reshape(B, F)                               # layout plumbing only
    params = jnp.stack(
        [dense.reshape(F), label_outputs.reshape(F), label_biases.reshape(F)],
        axis=0)                                                     # (3, F): one DMA stream

    h_item = jnp.dtype(hidden_states.dtype).itemsize
    o_item = out_dtype.itemsize
    p_item = jnp.dtype(params.dtype).itemsize

    tile_budget, vmem_limit = _vmem_policy()
    num_cores = _tensorcores_per_chip()
    TB, TF = _select_tiles(B, F, h_item, o_item, p_item, tile_budget, num_cores)
    grid = (pl.cdiv(F, TF), pl.cdiv(B, TB))     # rows innermost: param tile stays resident

    epilogue_dtype = jnp.float32
    if (out_dtype == jnp.bfloat16 and hidden_states.dtype == jnp.bfloat16
            and params.dtype == jnp.bfloat16 and _supports_bf16_alu()):
        epilogue_dtype = jnp.bfloat16

    cost = pl.CostEstimate(
        flops=3 * B * F,
        transcendentals=B * F,
        bytes_accessed=B * F * (h_item + o_item) + 3 * F * p_item,
    )

    out2d = pl.pallas_call(
        functools.partial(_label_pooler_kernel, epilogue_dtype=epilogue_dtype),
        out_shape=jax.ShapeDtypeStruct((B, F), out_dtype),
        grid=grid,
        in_specs=[
            pl.BlockSpec((TB, TF), lambda j, i: (i, j)),   # hidden: (row block, col block)
            pl.BlockSpec((3, TF), lambda j, i: (0, j)),    # stacked params: col block only
        ],
        out_specs=pl.BlockSpec((TB, TF), lambda j, i: (i, j)),
        compiler_params=pltpu.CompilerParams(
            dimension_semantics=("parallel", "parallel"),
            vmem_limit_bytes=vmem_limit,
        ),
        cost_estimate=cost,
    )(h2d, params)

    return out2d.reshape(B, L, D)


if __name__ == "__main__":
    # Small config consistent with the module: num_labels=8, d_model=32, batch=2
    B, NUM_LABELS, D_MODEL = 2, 8, 32

    key = jax.random.PRNGKey(0)
    k_h, k_dense, k_out = jax.random.split(key, 3)

    # Deterministic parameter init mirroring __init__:
    #   dense, label_outputs ~ N(0, 0.02); label_biases ~ N(0, 0.0) == zeros
    dense = 0.02 * jax.random.normal(k_dense, (NUM_LABELS, D_MODEL), jnp.float32)
    label_outputs = 0.02 * jax.random.normal(k_out, (NUM_LABELS, D_MODEL), jnp.float32)
    label_biases = jnp.zeros((NUM_LABELS, D_MODEL), jnp.float32)

    hidden_states = jax.random.normal(k_h, (B, NUM_LABELS, D_MODEL), jnp.float32)

    # Force the Pallas path so the kernel itself is exercised at this tiny size
    # (the production dispatch would route such inputs to plain XLA fusion).
    out = label_pooler(hidden_states, dense, label_outputs, label_biases, use_pallas=True)
    out = jax.block_until_ready(out)

    ref = label_pooler_ref(hidden_states, dense, label_outputs, label_biases)
    assert out.shape == (B, NUM_LABELS, D_MODEL)
    assert out.dtype == ref.dtype
    assert jnp.allclose(out, ref, atol=1e-6, rtol=1e-6)

    print("KERNEL_OK")
</pallas_src>

<mosaic_0001>
module attributes {stable_mosaic.version = 11 : i64} {
  func.func @_label_pooler_kernel(%arg0: i32, %arg1: i32, %arg2: memref<2x256xf32, #tpu.memory_space<vmem>>, %arg3: memref<3x256xf32, #tpu.memory_space<vmem>>, %arg4: memref<2x256xf32, #tpu.memory_space<vmem>>) attributes {dimension_semantics = [#tpu.dimension_semantics<parallel>, #tpu.dimension_semantics<parallel>], iteration_bounds = array<i64: 1, 1>, scalar_prefetch = 0 : i64, scratch_operands = 0 : i64, tpu.core_type = #tpu.core_type<tc>, window_params = [{transform_indices = @transform_0, window_bounds = array<i64: 2, 256>}, {transform_indices = @transform_1, window_bounds = array<i64: 3, 256>}, {transform_indices = @transform_2, window_bounds = array<i64: 2, 256>}]} {
    %c0 = arith.constant 0 : index
    %c0_0 = arith.constant 0 : index
    %0 = vector.load %arg2[%c0, %c0_0] : memref<2x256xf32, #tpu.memory_space<vmem>>, vector<2x256xf32>
    %c0_1 = arith.constant 0 : index
    %c0_2 = arith.constant 0 : index
    %1 = vector.load %arg3[%c0_1, %c0_2] : memref<3x256xf32, #tpu.memory_space<vmem>>, vector<1x256xf32>
    %c1 = arith.constant 1 : index
    %c0_3 = arith.constant 0 : index
    %2 = vector.load %arg3[%c1, %c0_3] : memref<3x256xf32, #tpu.memory_space<vmem>>, vector<1x256xf32>
    %c2 = arith.constant 2 : index
    %c0_4 = arith.constant 0 : index
    %3 = vector.load %arg3[%c2, %c0_4] : memref<3x256xf32, #tpu.memory_space<vmem>>, vector<1x256xf32>
    %4 = vector.broadcast %1 : vector<1x256xf32> to vector<2x256xf32>
    %5 = arith.mulf %0, %4 : vector<2x256xf32>
    %6 = math.tanh %5 : vector<2x256xf32>
    %7 = vector.broadcast %2 : vector<1x256xf32> to vector<2x256xf32>
    %8 = arith.mulf %6, %7 : vector<2x256xf32>
    %9 = vector.broadcast %3 : vector<1x256xf32> to vector<2x256xf32>
    %10 = arith.addf %8, %9 : vector<2x256xf32>
    %c0_5 = arith.constant 0 : index
    %c0_6 = arith.constant 0 : index
    %11 = vector.load %arg4[%c0_5, %c0_6] : memref<2x256xf32, #tpu.memory_space<vmem>>, vector<2x256xf32>
    tpu.vector_store %arg4[%c0_5, %c0_6], %10 {strides = array<i32>} : memref<2x256xf32, #tpu.memory_space<vmem>>, vector<2x256xf32>,
    return
  }
  func.func @transform_0(%arg0: i32, %arg1: i32) -> (i32, i32) {
    %c0_i32 = arith.constant 0 : i32
    return %arg1, %arg0 : i32, i32
  }
  func.func @transform_1(%arg0: i32, %arg1: i32) -> (i32, i32) {
    %c0_i32 = arith.constant 0 : i32
    %c0_i32_0 = arith.constant 0 : i32
    return %c0_i32, %arg0 : i32, i32
  }
  func.func @transform_2(%arg0: i32, %arg1: i32) -> (i32, i32) {
    %c0_i32 = arith.constant 0 : i32
    return %arg1, %arg0 : i32, i32
  }
}

</mosaic_0001>

<bundles_post_ra>
// kernel: tpu_custom_call.1
= control target key start
LH: loop header
LB: loop body
LE: loop exit
PB: predicated region body
PF: predicated region fallthrough
CT: control target
= control target key end

     0   :  { %7 = vsyncpa [#allocation3], 0  ;;  %s198_s0 = inlined_call_operand.hbm [shape: f32[2,256], index: 0, kind: input, shape index: {}]   ;;  %s199_s1 = inlined_call_operand.hbm [shape: f32[3,256], index: 1, kind: input, shape index: {}]   ;;  %s200_s2 = inlined_call_operand.hbm [shape: f32[2,256], index: 2, kind: output, shape index: {}]  }
   0x1   :  { %8 = vsyncpa [#allocation6], 0 }
   0x2   :  { %9 = vsyncpa [#allocation4], 0  ;;  %s15_s11 = sshll.u32 %s198_s0, 4  ;;  %s171_s12 = smov [#allocation2]   ;;  %s16_s11 = int_to_ptr.hbm [resolvable:$true] %s15_s11 }
   0x3   :  { %s17_s13 = sshll.u32 %s171_s12, 4  ;;  %s26_s16 = sshll.u32 %s199_s1, 4  ;;  %s18_s13 = int_to_ptr.vmem [resolvable:$true] %s17_s13  ;;  %s27_s16 = int_to_ptr.hbm [resolvable:$true] %s26_s16 }
   0x4   :  { %20 = dma.hbm_to_vmem [thread:$0]  %s16_s11, 64, %s18_s13, [#allocation3]  }
   0x5   :  { %s172_s17 = smov [#allocation5]  }
   0x6   :  { %s28_s18 = sshll.u32 %s172_s17, 4  ;;  %s29_s18 = int_to_ptr.vmem [resolvable:$true] %s28_s18 }
   0x7   :  { %31 = dma.hbm_to_vmem [thread:$0]  %s27_s16, 128, %s29_s18, [#allocation6]  }
   0x8   :  { %165 = dma.done.wait [#allocation3], 64  }
   0x9   :  { %166 = vsyncadd [#allocation3], 4294967232 }
   0xa   :  { %167 = dma.done.wait [#allocation6], 128  }
   0xb   :  { %168 = vsyncadd [#allocation6], 4294967168  ;;  %v41_v0 = vld [vmem:[#allocation5] ss:$4 sm:$0x3]  ;;  %vm50_vm0 = vcmask 1041408  }
   0xc   :  { %v43_v1 = vld [vmem:[#allocation5 + $0x1] ss:$4 sm:$0x3]  ;;  %v47_v2 = vperm.slane %v41_v0, 0  ;;  %v48_v3 = vperm.slane %v41_v0, 1  ;;  %s173_s0 = smov [#allocation7]  }
   0xd   :  { %v40_v4 = vld [vmem:[#allocation2] sm:$0xf]  ;;  %v45_v5 = vld [vmem:[#allocation5 + $0x2] ss:$4 sm:$0x3]  ;;  %v57_v7 = vperm.slane %v43_v1, 1 }
   0xe   :  { %v49_v6 = vrot.slane %v48_v3, 6  ;;  %v64_v10 = vperm.slane %v45_v5, 1  ;;  %v56_v11 = vperm.slane %v43_v1, 0  ;;  %v63_v13 = vperm.slane %v45_v5, 0  ;;  %s75_s1 = sshll.u32 %s173_s0, 4  ;;  %s77_s21 = sshll.u32 %s200_s2, 4  ;;  %s76_s1 = int_to_ptr.vmem [resolvable:$true] %s75_s1  ;;  %s78_s21 = int_to_ptr.hbm [resolvable:$true] %s77_s21 }
   0xf   :  { %v58_v12 = vrot.slane %v57_v7, 6 }
  0x10   :  { %v51_v8 = vsel %vm50_vm0, %v47_v2, %v49_v6  ;;  %v65_v14 = vrot.slane %v64_v10, 6 }
  0x11   :  { %v53_v9 = vmul.f32 %v51_v8, %v40_v4  ;;  %v59_v15 = vsel %vm50_vm0, %v56_v11, %v58_v12 }
  0x12   :  { %v66_v17 = vsel %vm50_vm0, %v63_v13, %v65_v14 }
  0x13   :  { %91 = vtanh.f32 %v53_v9 }
  0x19   :  { %v92_v16 = vpop.eup %91 }
  0x1a   :  { %v61_v18 = vmul.f32 %v92_v16, %v59_v15 }
  0x1c   :  { %v68_v19 = vadd.f32 %v66_v17, %v61_v18 }
  0x1e   :  { %69 = vst [vmem:[#allocation7] sm:$0xf] %v68_v19 }
  0x1f   :  { %80 = dma.vmem_to_hbm [thread:$0]  %s76_s1, 64, %s78_s21, [#allocation4]  }
  0x20   :  { %169 = dma.done.wait [#allocation4], 64  }
  0x21   :  { %170 = vsyncadd [#allocation4], 4294967232 }
  0x22   :  { %85 = vsyncpa [#allocation3], 1 }
  0x23   :  { %86 = vsyncpa [#allocation6], 1 }
  0x24   :  { %87 = vsyncpa [#allocation4], 1 }

</bundles_post_ra>
